<compile_context>
chip_gen: v7x
topology: tpu7x:2x2x1
jax: 0.10.0
libtpu: 0.0.40
codegen_flags: <defaults>
</compile_context>

<pallas_src>
import jax
import jax.numpy as jnp
from jax.experimental import pallas as pl
from jax.experimental.pallas import tpu as pltpu

LANES = 128
SUBLANES = 8
ROW_ALIGN = 16           # valid sublane tiling for f32 and packed bf16/fp16
MAX_TILE_ROWS = 2048     # 2048 x 128 f32 = 1 MiB per input per pipeline buffer
CORE_SPLITS = 2          # leading parallel axis -> 2 TCs on v7x, loop elsewhere


def _cdiv(a, b):
    return -(-a // b)


def _round_up(x, m):
    return _cdiv(x, m) * m


def _kld_kernel(mean_ref, var_ref, out_ref):
    i = pl.program_id(1)

    @pl.when(i == 0)
    def _():
        out_ref[...] = jnp.zeros_like(out_ref)

    m = mean_ref[...].astype(jnp.float32)
    v = var_ref[...].astype(jnp.float32)
    sq_v = v * v
    contrib = m * m + sq_v - jnp.log(sq_v) - 1.0          # (tile_rows, 128)
    # Fold sublane-block-aligned rows with plain VPU adds into the resident
    # (8, 128) accumulator; keep expensive cross-lane reduces out of the loop.
    out_ref[...] += contrib.reshape(-1, SUBLANES, LANES).sum(axis=0)


@jax.jit
def kld_criterion(mean, var):
    """Pallas implementation of KLDCriterion.forward (returns a scalar)."""
    total = mean.size
    mean_flat = mean.reshape(-1)
    var_flat = var.reshape(-1)

    rows_needed = _cdiv(total, LANES)
    tile_rows = min(MAX_TILE_ROWS,
                    _round_up(_cdiv(rows_needed, CORE_SPLITS), ROW_ALIGN))
    rows_padded = _round_up(rows_needed, tile_rows * CORE_SPLITS)
    tiles_per_core = (rows_padded // tile_rows) // CORE_SPLITS

    pad = rows_padded * LANES - total
    # Padding with (mean=0, var=1) contributes 0^2 + 1^2 - log(1) - 1 == 0.
    mean2d = jnp.pad(mean_flat, (0, pad)).reshape(rows_padded, LANES)
    var2d = jnp.pad(var_flat, (0, pad),
                    constant_values=1).reshape(rows_padded, LANES)

    in_itemsize = (jnp.dtype(mean.dtype).itemsize
                   + jnp.dtype(var.dtype).itemsize)
    block_bytes = tile_rows * LANES * in_itemsize
    # 2 pipeline buffers for the inputs + headroom for output/accumulator.
    vmem_limit = int(max(2 * block_bytes + (1 << 20), 16 << 20))

    partials = pl.pallas_call(
        _kld_kernel,
        out_shape=jax.ShapeDtypeStruct((CORE_SPLITS * SUBLANES, LANES),
                                       jnp.float32),
        grid_spec=pl.GridSpec(
            grid=(CORE_SPLITS, tiles_per_core),
            in_specs=[
                pl.BlockSpec((tile_rows, LANES),
                             lambda c, i: (c * tiles_per_core + i, 0)),
                pl.BlockSpec((tile_rows, LANES),
                             lambda c, i: (c * tiles_per_core + i, 0)),
            ],
            out_specs=pl.BlockSpec((SUBLANES, LANES), lambda c, i: (c, 0)),
        ),
        compiler_params=pltpu.CompilerParams(
            dimension_semantics=("parallel", "arbitrary"),
            vmem_limit_bytes=vmem_limit),
    )(mean2d, var2d)

    return 0.5 * jnp.sum(partials)


class KLDCriterion:
    """Thin Python mirror of the nn.Module (coeff stored but unused in forward)."""

    def __init__(self, coeff):
        self.coeff = coeff

    def __call__(self, mean, var):
        return kld_criterion(mean, var)


if __name__ == "__main__":
    key = jax.random.PRNGKey(0)
    k_mean, k_var = jax.random.split(key)

    # NCHW-shaped inputs consistent with a VAE-style mean/var pair.
    shape = (2, 4, 16, 16)
    mean = jax.random.normal(k_mean, shape, dtype=jnp.float32)
    # keep var strictly away from 0 so log(var^2) is finite
    var = jax.random.uniform(k_var, shape, dtype=jnp.float32,
                             minval=0.5, maxval=1.5)

    crit = KLDCriterion(coeff=1.0)
    loss = jax.block_until_ready(crit(mean, var))

    # correctness check against pure-JAX reference of the PyTorch forward
    ref = 0.5 * jnp.sum(mean ** 2 + var ** 2 - jnp.log(var ** 2) - 1.0)
    assert jnp.allclose(loss, ref, rtol=1e-5, atol=1e-5), (loss, ref)

    # Native low-precision streaming path (no wrapper upcast; cast in-kernel).
    mean_bf16 = mean.astype(jnp.bfloat16)
    var_bf16 = var.astype(jnp.bfloat16)
    loss_bf16 = jax.block_until_ready(crit(mean_bf16, var_bf16))
    m32 = mean_bf16.astype(jnp.float32)
    v32 = var_bf16.astype(jnp.float32)
    ref_bf16 = 0.5 * jnp.sum(m32 ** 2 + v32 ** 2 - jnp.log(v32 ** 2) - 1.0)
    assert jnp.allclose(loss_bf16, ref_bf16, rtol=1e-3, atol=1e-3), (
        loss_bf16, ref_bf16)

    print("KERNEL_OK")
</pallas_src>

<mosaic_0001>
module attributes {stable_mosaic.version = 11 : i64} {
  func.func @_kld_kernel(%arg0: i32, %arg1: i32, %arg2: memref<16x128xf32, #tpu.memory_space<vmem>>, %arg3: memref<16x128xf32, #tpu.memory_space<vmem>>, %arg4: memref<8x128xf32, #tpu.memory_space<vmem>>) attributes {dimension_semantics = [#tpu.dimension_semantics<parallel>, #tpu.dimension_semantics<arbitrary>], iteration_bounds = array<i64: 2, 1>, scalar_prefetch = 0 : i64, scratch_operands = 0 : i64, tpu.core_type = #tpu.core_type<tc>, window_params = [{transform_indices = @transform_0, window_bounds = array<i64: 16, 128>}, {transform_indices = @transform_1, window_bounds = array<i64: 16, 128>}, {transform_indices = @transform_2, window_bounds = array<i64: 8, 128>}]} {
    %c0_i32 = arith.constant 0 : i32
    %0 = arith.cmpi eq, %arg1, %c0_i32 : i32
    %1 = arith.extui %0 : i1 to i32
    %c0_i32_0 = arith.constant 0 : i32
    %2 = arith.cmpi ne, %1, %c0_i32_0 : i32
    scf.if %2 {
      %cst_9 = arith.constant 0.000000e+00 : f32
      %17 = vector.broadcast %cst_9 : f32 to vector<8x128xf32>
      %c0_10 = arith.constant 0 : index
      %c0_11 = arith.constant 0 : index
      %18 = vector.load %arg4[%c0_10, %c0_11] : memref<8x128xf32, #tpu.memory_space<vmem>>, vector<8x128xf32>
      tpu.vector_store %arg4[%c0_10, %c0_11], %17 {strides = array<i32>} : memref<8x128xf32, #tpu.memory_space<vmem>>, vector<8x128xf32>,
    } else {
    }
    %c0 = arith.constant 0 : index
    %c0_1 = arith.constant 0 : index
    %3 = vector.load %arg2[%c0, %c0_1] : memref<16x128xf32, #tpu.memory_space<vmem>>, vector<16x128xf32>
    %c0_2 = arith.constant 0 : index
    %c0_3 = arith.constant 0 : index
    %4 = vector.load %arg3[%c0_2, %c0_3] : memref<16x128xf32, #tpu.memory_space<vmem>>, vector<16x128xf32>
    %5 = arith.mulf %4, %4 : vector<16x128xf32>
    %6 = arith.mulf %3, %3 : vector<16x128xf32>
    %7 = arith.addf %6, %5 : vector<16x128xf32>
    %8 = math.log %5 : vector<16x128xf32>
    %9 = arith.subf %7, %8 : vector<16x128xf32>
    %cst = arith.constant 1.000000e+00 : f32
    %10 = vector.broadcast %cst : f32 to vector<16x128xf32>
    %11 = arith.subf %9, %10 : vector<16x128xf32>
    %c0_4 = arith.constant 0 : index
    %c0_5 = arith.constant 0 : index
    %12 = vector.load %arg4[%c0_4, %c0_5] : memref<8x128xf32, #tpu.memory_space<vmem>>, vector<8x128xf32>
    %13 = vector.shape_cast %11 : vector<16x128xf32> to vector<2x8x128xf32>
    %cst_6 = arith.constant dense<0.000000e+00> : vector<8x128xf32>
    %14 = vector.multi_reduction <add>, %13, %cst_6 [0] : vector<2x8x128xf32> to vector<8x128xf32>
    %15 = arith.addf %12, %14 : vector<8x128xf32>
    %c0_7 = arith.constant 0 : index
    %c0_8 = arith.constant 0 : index
    %16 = vector.load %arg4[%c0_7, %c0_8] : memref<8x128xf32, #tpu.memory_space<vmem>>, vector<8x128xf32>
    tpu.vector_store %arg4[%c0_7, %c0_8], %15 {strides = array<i32>} : memref<8x128xf32, #tpu.memory_space<vmem>>, vector<8x128xf32>,
    return
  }
  func.func @transform_0(%arg0: i32, %arg1: i32) -> (i32, i32) {
    %c1_i32 = arith.constant 1 : i32
    %0 = arith.muli %arg0, %c1_i32 : i32
    %1 = arith.addi %0, %arg1 : i32
    %c0_i32 = arith.constant 0 : i32
    %c0_i32_0 = arith.constant 0 : i32
    return %1, %c0_i32 : i32, i32
  }
  func.func @transform_1(%arg0: i32, %arg1: i32) -> (i32, i32) {
    %c1_i32 = arith.constant 1 : i32
    %0 = arith.muli %arg0, %c1_i32 : i32
    %1 = arith.addi %0, %arg1 : i32
    %c0_i32 = arith.constant 0 : i32
    %c0_i32_0 = arith.constant 0 : i32
    return %1, %c0_i32 : i32, i32
  }
  func.func @transform_2(%arg0: i32, %arg1: i32) -> (i32, i32) {
    %c0_i32 = arith.constant 0 : i32
    %c0_i32_0 = arith.constant 0 : i32
    return %arg0, %c0_i32 : i32, i32
  }
}

</mosaic_0001>

<bundles_post_ra>
// kernel: kld_criterion.1
= control target key start
LH: loop header
LB: loop body
LE: loop exit
PB: predicated region body
PF: predicated region fallthrough
CT: control target
= control target key end

     0   :  { %s374_s9 = smov 0   ;;  %s376_s10 = smov 0   ;;  %s415_s0 = inlined_call_operand.vmem [shape: f32[32,128], index: 0, kind: input, shape index: {}]   ;;  %s416_s1 = inlined_call_operand.vmem [shape: f32[32,128], index: 1, kind: input, shape index: {}]   ;;  %s417_s2 = inlined_call_operand.vmem [shape: f32[16,128], index: 2, kind: output, shape index: {}]  }
   0x1   :  { %s378_s11 = smov 0  }
   0x2 LB: > { %s24_s12 = sadd.s32 1, %s353_s10  ;;  %p296_p0 = scmp.ge.s32.totalorder %s357_s11, 1  ;;  %s357_s11 = sphi %s378_s11, %s12_s11   ;;  %s353_s10 = sphi %s376_s10, %s419_s10   ;;  %s349_s9 = sphi %s374_s9, %s418_s9  }
   0x3   : > { %p26_p1 = scmp.ge.s32.totalorder %s24_s12, 2  ;;  %p144_p2 = scmp.lt.s32.totalorder %s357_s11, 3 }
   0x5   : > { %s421_s12 = smov (%p26_p1, %s24_s12), 0  ;;  %p145_p3 = pnand %p296_p0, %p144_p2 }
   0x6   : > { %s297_s13 = sshll.u32 (!%p145_p3), %s349_s9, 1  ;;  %p188_p5 = scmp.lt.s32.totalorder (!%p145_p3), %s349_s9, 1 }
   0x7   : > { %148 = sbr.rel (%p145_p3) target bundleno = 41 (0x29), region = 28  ;;  %p174_p4 = scmp.lt.s32.totalorder (!%p145_p3), %s297_s13, 3 }
   0xe   : > { %s423_s13 = smov (!%p174_p4, %s297_s13), 3  ;;  %s425_s9 = smov (!%p188_p5, %s349_s9), 1 }
   0xf   : > { %s298_s14 = sshll.u32 %s423_s13, 3  ;;  %s301_s21 = sshll.u32 %s425_s9, 3 }
  0x10   : > { %s185_s17 = scalar_lea.vmem %s416_s1, %s298_s14  ;;  %s177_s20 = scalar_lea.vmem %s415_s0, %s298_s14 }
  0x11   : > { %v199_v0 = vld [vmem:[%s185_s17] sm:$0xff]  ;;  %v200_v1 = vld [vmem:[%s185_s17 + $0x8] sm:$0xff]  ;;  %s191_s24 = scalar_lea.vmem %s417_s2, %s301_s21 }
  0x12   : > { %v201_v2 = vmul.f32 %v199_v0, %v199_v0  ;;  %v202_v3 = vmul.f32 %v200_v1, %v200_v1  ;;  %v197_v4 = vld [vmem:[%s177_s20] sm:$0xff]  ;;  %v198_v5 = vld [vmem:[%s177_s20 + $0x8] sm:$0xff] }
  0x13   : > { %v203_v6 = vmul.f32 %v197_v4, %v197_v4  ;;  %v204_v7 = vmul.f32 %v198_v5, %v198_v5 }
  0x14   : > { %331 = vlog2.f32 %v201_v2 }
  0x15   : > { %333 = vlog2.f32 %v202_v3  ;;  %v205_v8 = vadd.f32 %v203_v6, %v201_v2  ;;  %v206_v10 = vadd.f32 %v204_v7, %v202_v3 }
  0x1e   : > { %v332_v9 = vpop.eup %331 }
  0x1f   : > { %v334_v11 = vpop.eup %333  ;;  %v208_v12 = vmul.f32 0.6931472, %v332_v9 }
  0x20   : > { %v210_v13 = vmul.f32 0.6931472, %v334_v11 }
  0x21   : > { %v211_v14 = vsub.f32 %v205_v8, %v208_v12 }
  0x22   : > { %v212_v15 = vsub.f32 %v206_v10, %v210_v13 }
  0x23   : > { %v302_v16 = vadd.f32 -1.0, %v211_v14 }
  0x24   : > { %v303_v17 = vadd.f32 -1.0, %v212_v15 }
  0x26   : > { %v216_v18 = vadd.f32 %v303_v17, %v302_v16 }
  0x28   : > { %218 = vst [vmem:[%s191_s24] sm:$0xff] %v216_v18 }
  0x29 PF: > { %s12_s11 = sadd.s32 1, %s357_s11   ;;  %s418_s9 = smov %s353_s10 }
  0x2a   : > { %p9_p6 = scmp.ge.s32.totalorder %s12_s11, 4   ;;  %s419_s10 = smov %s421_s12 }
  0x2c   :  { %11 = sbr.rel (!%p9_p6) target bundleno = 2 (0x2), region = 65 }

</bundles_post_ra>
